<compile_context>
chip_gen: v5e
topology: v5e:2x2
jax: 0.10.0
libtpu: 0.0.40
codegen_flags: <defaults>
</compile_context>

<pallas_src>
import jax
import jax.numpy as jnp
from jax.experimental import pallas as pl
from jax.experimental.pallas import tpu as pltpu


def _round_up(a, b):
    return ((a + b - 1) // b) * b


def _linear_kernel_acc(x_ref, w_ref, b_ref, o_ref, acc_ref):
    """K-reduction grid step: acc += x @ w.T ; finalize adds bias and casts."""
    k = pl.program_id(2)

    @pl.when(k == 0)
    def _():
        acc_ref[...] = jnp.zeros_like(acc_ref)

    # w_ref is a (tn, tk) tile of the native (N, K) weight; contract K with K
    # so no transpose is ever materialized (the MXU handles the trans-RHS form).
    acc_ref[...] += jax.lax.dot_general(
        x_ref[...], w_ref[...],
        dimension_numbers=(((1,), (1,)), ((), ())),
        preferred_element_type=jnp.float32,
    )

    @pl.when(k == pl.num_programs(2) - 1)
    def _():
        o_ref[...] = (acc_ref[...] + b_ref[...].astype(jnp.float32)).astype(o_ref.dtype)


def _linear_kernel_single_k(x_ref, w_ref, b_ref, o_ref):
    """K fits in one block: no scratch, no init/finalize phases."""
    acc = jax.lax.dot_general(
        x_ref[...], w_ref[...],
        dimension_numbers=(((1,), (1,)), ((), ())),
        preferred_element_type=jnp.float32,
    )
    o_ref[...] = (acc + b_ref[...].astype(jnp.float32)).astype(o_ref.dtype)


def _vmem_limit_bytes():
    """~75% of this generation's VMEM (v7x: 64 MiB/TC, v5e/v6e: 128 MiB)."""
    cap = 64 * 1024 * 1024  # conservative fallback (v7x per-TC VMEM)
    try:
        info = pltpu.get_tpu_info()
        cap = int(getattr(info, "vmem_capacity_bytes", cap))
    except Exception:
        pass
    return min((cap * 3) // 4, 100 * 1024 * 1024)


def _weight_block_spec(tn, tk, deep_buffer):
    index_map = lambda i, j, k: (j, k)
    if deep_buffer:
        try:
            # Deeper prefetch of the weight stream for skinny-M (decode) shapes.
            return pl.BlockSpec((tn, tk), index_map, pipeline_mode=pl.Buffered(3))
        except TypeError:
            pass
    return pl.BlockSpec((tn, tk), index_map)


def column_parallel_linear(x, weight, bias=None, *, tm=512, tn=512, tk=1024,
                           compute_dtype=None):
    """y = x @ weight.T + bias, fused matmul + bias as a Pallas TPU kernel.

    x:      (..., in_features)
    weight: (out_per_partition, in_features)   -- PyTorch nn.Linear layout
    bias:   (out_per_partition,) or None
    compute_dtype: optional MXU operand dtype (e.g. jnp.bfloat16); the
        accumulator stays f32 and the output keeps x.dtype.
    """
    *lead, K = x.shape
    N, K_w = weight.shape
    assert K == K_w, "in_features mismatch"

    out_dtype = x.dtype
    if bias is None:
        bias = jnp.zeros((N,), dtype=weight.dtype)
    if compute_dtype is not None:
        x = x.astype(compute_dtype)
        weight = weight.astype(compute_dtype)

    x2d = x.reshape(-1, K)
    M = x2d.shape[0]
    b2d = bias.reshape(1, N)

    # ---- Tile selection -------------------------------------------------
    # M / N are never padded (Pallas masks ragged edge blocks); only the K
    # reduction axis must be zero padded when the K tile does not divide it.
    tm = min(tm, M)          # either a multiple of 8 (default) or the full dim
    tn = min(tn, N)          # either a multiple of 128 (default) or the full dim
    if K <= tk:
        tk, Kp = K, K        # single K block, no padding at all
    else:
        Kp = _round_up(K, 128)
        tk = min(tk, Kp)
        while Kp % tk:
            tk //= 2         # stays a multiple of 128 because Kp is

    if Kp != K:
        x2d = jnp.pad(x2d, ((0, 0), (0, Kp - K)))
        weight = jnp.pad(weight, ((0, 0), (0, Kp - K)))

    grid = (pl.cdiv(M, tm), pl.cdiv(N, tn), Kp // tk)
    g_m, g_n, g_k = grid

    # ---- Specs ------------------------------------------------------------
    x_spec = pl.BlockSpec((tm, tk), lambda i, j, k: (i, k))
    w_spec = _weight_block_spec(tn, tk, deep_buffer=(M <= 256 and g_k >= 4))
    b_spec = pl.BlockSpec((1, tn), lambda i, j, k: (0, j))
    o_spec = pl.BlockSpec((tm, tn), lambda i, j, k: (i, j))

    if g_k == 1:
        kernel = _linear_kernel_single_k
        scratch_shapes = []
    else:
        kernel = _linear_kernel_acc
        scratch_shapes = [pltpu.VMEM((tm, tn), jnp.float32)]

    x_item = jnp.dtype(x2d.dtype).itemsize
    w_item = jnp.dtype(weight.dtype).itemsize
    o_item = jnp.dtype(out_dtype).itemsize
    cost = pl.CostEstimate(
        flops=2 * M * N * Kp,
        transcendentals=0,
        # x is re-streamed once per N block; the weight once per M block.
        bytes_accessed=(g_n * M * Kp * x_item
                        + g_m * N * Kp * w_item
                        + M * N * o_item
                        + N * w_item),
    )

    out2d = pl.pallas_call(
        kernel,
        out_shape=jax.ShapeDtypeStruct((M, N), out_dtype),
        grid_spec=pltpu.PrefetchScalarGridSpec(
            num_scalar_prefetch=0,
            grid=grid,
            in_specs=[x_spec, w_spec, b_spec],
            out_specs=o_spec,
            scratch_shapes=scratch_shapes,
        ),
        compiler_params=pltpu.CompilerParams(
            dimension_semantics=("parallel", "parallel", "arbitrary"),
            vmem_limit_bytes=_vmem_limit_bytes(),
        ),
        cost_estimate=cost,
    )(x2d, weight, b2d)

    return out2d.reshape(*lead, N)


def _reference(x, weight, bias):
    return jnp.einsum("...k,nk->...n", x, weight) + bias


if __name__ == "__main__":
    # Module config (world_size == 1 -> out_per_partition == out_features).
    batch, seq, in_features, out_features = 2, 8, 32, 64

    key = jax.random.PRNGKey(0)
    k_x, k_w, k_b = jax.random.split(key, 3)

    x = jax.random.normal(k_x, (batch, seq, in_features), dtype=jnp.float32)
    weight = jax.random.normal(k_w, (out_features, in_features), dtype=jnp.float32)
    bias = jax.random.normal(k_b, (out_features,), dtype=jnp.float32)

    out = column_parallel_linear(x, weight, bias)
    out = jax.block_until_ready(out)

    ref = _reference(x, weight, bias)
    assert out.shape == (batch, seq, out_features)
    assert jnp.allclose(out, ref, atol=1e-4, rtol=1e-4), "mismatch vs reference"

    print("KERNEL_OK")
</pallas_src>

<mosaic_0001>
module attributes {stable_mosaic.version = 11 : i64} {
  func.func @_linear_kernel_single_k(%arg0: i32, %arg1: i32, %arg2: i32, %arg3: memref<16x32xf32, #tpu.memory_space<vmem>>, %arg4: memref<64x32xf32, #tpu.memory_space<vmem>>, %arg5: memref<1x64xf32, #tpu.memory_space<vmem>>, %arg6: memref<16x64xf32, #tpu.memory_space<vmem>>) attributes {dimension_semantics = [#tpu.dimension_semantics<parallel>, #tpu.dimension_semantics<parallel>, #tpu.dimension_semantics<arbitrary>], iteration_bounds = array<i64: 1, 1, 1>, scalar_prefetch = 0 : i64, scratch_operands = 0 : i64, tpu.core_type = #tpu.core_type<tc>, window_params = [{transform_indices = @transform_0, window_bounds = array<i64: 16, 32>}, {transform_indices = @transform_1, window_bounds = array<i64: 64, 32>}, {transform_indices = @transform_2, window_bounds = array<i64: 1, 64>}, {transform_indices = @transform_3, window_bounds = array<i64: 16, 64>}]} {
    %c0 = arith.constant 0 : index
    %c0_0 = arith.constant 0 : index
    %0 = vector.load %arg3[%c0, %c0_0] : memref<16x32xf32, #tpu.memory_space<vmem>>, vector<16x32xf32>
    %c0_1 = arith.constant 0 : index
    %c0_2 = arith.constant 0 : index
    %1 = vector.load %arg4[%c0_1, %c0_2] : memref<64x32xf32, #tpu.memory_space<vmem>>, vector<64x32xf32>
    %cst = arith.constant dense<0.000000e+00> : vector<16x64xf32>
    %2 = tpu.matmul %0, %1, %cst {dimension_numbers = #tpu.dot_dimension_numbers<[1], [1], [0], [0], [0, 0, 1, 0], [], []>} : vector<16x32xf32>, vector<64x32xf32>, vector<16x64xf32> -> vector<16x64xf32>
    %c0_3 = arith.constant 0 : index
    %c0_4 = arith.constant 0 : index
    %3 = vector.load %arg5[%c0_3, %c0_4] : memref<1x64xf32, #tpu.memory_space<vmem>>, vector<1x64xf32>
    %4 = vector.broadcast %3 : vector<1x64xf32> to vector<16x64xf32>
    %5 = arith.addf %2, %4 : vector<16x64xf32>
    %c0_5 = arith.constant 0 : index
    %c0_6 = arith.constant 0 : index
    %6 = vector.load %arg6[%c0_5, %c0_6] : memref<16x64xf32, #tpu.memory_space<vmem>>, vector<16x64xf32>
    tpu.vector_store %arg6[%c0_5, %c0_6], %5 {strides = array<i32>} : memref<16x64xf32, #tpu.memory_space<vmem>>, vector<16x64xf32>,
    return
  }
  func.func @transform_0(%arg0: i32, %arg1: i32, %arg2: i32) -> (i32, i32) {
    %c0_i32 = arith.constant 0 : i32
    return %arg0, %arg2 : i32, i32
  }
  func.func @transform_1(%arg0: i32, %arg1: i32, %arg2: i32) -> (i32, i32) {
    %c0_i32 = arith.constant 0 : i32
    return %arg1, %arg2 : i32, i32
  }
  func.func @transform_2(%arg0: i32, %arg1: i32, %arg2: i32) -> (i32, i32) {
    %c0_i32 = arith.constant 0 : i32
    %c0_i32_0 = arith.constant 0 : i32
    return %c0_i32, %arg1 : i32, i32
  }
  func.func @transform_3(%arg0: i32, %arg1: i32, %arg2: i32) -> (i32, i32) {
    %c0_i32 = arith.constant 0 : i32
    return %arg0, %arg1 : i32, i32
  }
}

</mosaic_0001>

<bundles_post_ra>
// kernel: tpu_custom_call.1
= control target key start
LH: loop header
LB: loop body
LE: loop exit
PB: predicated region body
PF: predicated region fallthrough
CT: control target
= control target key end

     0   :  { %vm29_vm0 = vcmask 261120   ;;  %s229_s0 = inlined_call_operand.vmem [shape: f32[16,32], index: 0, kind: input, shape index: {}]   ;;  %s230_s1 = inlined_call_operand.vmem [shape: f32[64,32], index: 1, kind: input, shape index: {}]   ;;  %s231_s2 = inlined_call_operand.vmem [shape: f32[1,64], index: 2, kind: input, shape index: {}]   ;;  %s232_s3 = inlined_call_operand.hbm [shape: f32[16,64], index: 3, kind: output, shape index: {}]  }
   0x1   :  { %v24_v0 = vld [vmem:[%s230_s1 + $0x38] sm:$0xff]  ;;  %v23_v1 = vld [vmem:[%s230_s1 + $0x30] sm:$0xff] }
   0x2   :  { %104 = vmatpush.xpose.msk.msra.mxu0 %vm29_vm0, %v24_v0  ;;  %114 = vmatpush.xpose.msk.msra.mxu1 %vm29_vm0, %v24_v0 }
   0x3   :  { %8 = vsyncpa [#allocation3], 0  ;;  %v22_v2 = vld [vmem:[%s230_s1 + $0x28] sm:$0xff]  ;;  %v21_v3 = vld [vmem:[%s230_s1 + $0x20] sm:$0xff]  ;;  %s92_s10 = sshll.u32 %s232_s3, 4  ;;  %vm83_vm1 = vcmask 523264   ;;  %s93_s10 = int_to_ptr.hbm [resolvable:$true] %s92_s10 }
   0x4   :  { %v20_v4 = vld [vmem:[%s230_s1 + $0x18] sm:$0xff]  ;;  %v19_v5 = vld [vmem:[%s230_s1 + $0x10] sm:$0xff]  ;;  %v18_v6 = vld [vmem:[%s230_s1 + $0x8] sm:$0xff]  ;;  %s154_s11 = smov 8  }
   0x5   :  { %v17_v7 = vld [vmem:[%s230_s1] sm:$0xff]  ;;  %v16_v9 = vld [vmem:[%s229_s0 + $0x8] sm:$0xff]  ;;  %s152_s1 = smov [#allocation2]  }
   0x6   :  { %105 = vmatpush.xpose.msk.msra.mxu0 %vm29_vm0, %v23_v1  ;;  %115 = vmatpush.xpose.msk.msra.mxu1 %vm29_vm0, %v23_v1  ;;  %v15_v8 = vld [vmem:[%s229_s0] sm:$0xff]  ;;  %s90_s7 = sshll.u32 %s152_s1, 4  ;;  %s153_s0 = smov 128   ;;  %s91_s7 = int_to_ptr.vmem [resolvable:$true] %s90_s7 }
   0x7   :  { %v125_v10 = vld [vmem:[%s231_s2] ss:$0 sm:$0xff] }
   0xa   :  { %106 = vmatpush.xpose.msk.msra.mxu0 %vm29_vm0, %v22_v2  ;;  %116 = vmatpush.xpose.msk.msra.mxu1 %vm29_vm0, %v22_v2 }
   0xe   :  { %107 = vmatpush.xpose.msk.msra.mxu0 %vm29_vm0, %v21_v3  ;;  %117 = vmatpush.xpose.msk.msra.mxu1 %vm29_vm0, %v21_v3 }
  0x12   :  { %108 = vmatpush.xpose.msk.msra.mxu0 %vm29_vm0, %v20_v4  ;;  %118 = vmatpush.xpose.msk.msra.mxu1 %vm29_vm0, %v20_v4 }
  0x16   :  { %109 = vmatpush.xpose.msk.msra.mxu0 %vm29_vm0, %v19_v5  ;;  %119 = vmatpush.xpose.msk.msra.mxu1 %vm29_vm0, %v19_v5 }
  0x1a   :  { %110 = vmatpush.xpose.msk.msra.mxu0 %vm29_vm0, %v18_v6  ;;  %120 = vmatpush.xpose.msk.msra.mxu1 %vm29_vm0, %v18_v6 }
  0x1e   :  { %111 = vmatpush.xpose.msk.msra.mxu0 %vm29_vm0, %v17_v7  ;;  %121 = vmatpush.xpose.msk.msra.mxu1 %vm29_vm0, %v17_v7 }
  0x21   :  { %112 = vmatmul.msk.f32.vlgmr.msra.gmra.mxu0 %vm29_vm0, %v15_v8  ;;  %113 = vmatmul.msk.f32.vlgmr.msra.gmra.mxu1 %vm29_vm0, %v16_v9 }
  0x9e   :  { %v77_v11 = vpop.f32.mrf.mxu0  ;;  %v80_v12 = vpop.f32.mrf.mxu1 }
  0x9f   :  { %v78_v13 = vadd.f32 %v125_v10, %v77_v11  ;;  %v81_v14 = vadd.f32 %v125_v10, %v80_v12 }
  0xa1   :  { %84 = vst.msk [vmem:[#allocation2] sm:$0xff] %vm83_vm1, %v78_v13 }
  0xa2   :  { %85 = vst.msk [vmem:[#allocation2 + $0x8] sm:$0xff] %vm83_vm1, %v81_v14 }
  0xa3   :  { %98 = dma.vmem_to_hbm [thread:$0]  %s91_s7, 256, %s93_s10, [#allocation3], %s153_s0, %s153_s0, %s154_s11  }
  0xa4   :  { %150 = dma.done.wait [#allocation3], 256  }
  0xa5   :  { %151 = vsyncadd [#allocation3], 4294967040 }
  0xa6   :  { %103 = vsyncpa [#allocation3], 1 }

</bundles_post_ra>
